<compile_context>
chip_gen: v5e
topology: v5e:2x2
jax: 0.10.0
libtpu: 0.0.40
codegen_flags: <defaults>
</compile_context>

<pallas_src>
import functools

import jax
import jax.numpy as jnp
from jax import lax
from jax.experimental import pallas as pl
from jax.experimental.pallas import tpu as pltpu

EPS = 1e-5


# ----------------------------- Pallas kernels ------------------------------

def _gemm_bias_kernel(x_ref, w_ref, b_ref, o_ref, acc_ref, *, relu):
    """out = [relu]( x @ w + bias ), K-tiled with f32 accumulator."""
    k = pl.program_id(2)

    @pl.when(k == 0)
    def _():
        acc_ref[...] = jnp.zeros_like(acc_ref)

    acc_ref[...] += jnp.dot(x_ref[...], w_ref[...],
                            preferred_element_type=jnp.float32)

    @pl.when(k == pl.num_programs(2) - 1)
    def _():
        y = acc_ref[...] + b_ref[...]
        if relu:
            y = jnp.maximum(y, 0.0)
        o_ref[...] = y.astype(o_ref.dtype)


def _gemm_bias_res_kernel(x_ref, w_ref, b_ref, r_ref, o_ref, acc_ref, *, relu):
    """Same as above plus an identity-residual add before the ReLU."""
    k = pl.program_id(2)

    @pl.when(k == 0)
    def _():
        acc_ref[...] = jnp.zeros_like(acc_ref)

    acc_ref[...] += jnp.dot(x_ref[...], w_ref[...],
                            preferred_element_type=jnp.float32)

    @pl.when(k == pl.num_programs(2) - 1)
    def _():
        y = acc_ref[...] + b_ref[...] + r_ref[...].astype(jnp.float32)
        if relu:
            y = jnp.maximum(y, 0.0)
        o_ref[...] = y.astype(o_ref.dtype)


# ------------------------------ tiling helpers ------------------------------

def _round_up(x, m):
    return ((x + m - 1) // m) * m


def _pad2(a, rows, cols, dtype):
    return jnp.pad(a, ((0, rows - a.shape[0]),
                       (0, cols - a.shape[1]))).astype(dtype)


def _vmem_budget_bytes():
    """Per-generation VMEM budget (v5e/v6e: 128 MiB physical, v7x: 64 MiB)."""
    cap = None
    try:
        info = pltpu.get_tpu_info()
        for name in ("vmem_capacity_bytes", "vmem_bytes", "vmem_size_bytes"):
            v = getattr(info, name, None)
            if v:
                cap = int(v)
                break
    except Exception:
        cap = None
    if cap is None:
        cap = 64 * 1024 * 1024            # conservative (v7x-sized) fallback
    return min((cap * 3) // 4, 96 * 1024 * 1024)


def _tile_vmem_bytes(tm, tk, tn, out_bytes, res_bytes):
    """Estimated VMEM use of one grid step (double-buffered streamed operands)."""
    x = 2 * tm * tk * 2                   # bf16 patches
    w = 2 * tk * tn * 2                   # bf16 weights
    b = 2 * tn * 4                        # f32 bias row
    r = 2 * tm * tn * res_bytes           # bf16 residual (optional)
    acc = tm * tn * 4                     # f32 accumulator
    out = 2 * tm * tn * out_bytes         # output tile
    return x + w + b + r + acc + out


def _select_tiles(M, K, Cout, out_bytes, has_residual, budget):
    c_pad = _round_up(Cout, 128)
    # Cover all of Cout in one tile when <= 512 -> im2col stream read once.
    tn = min(c_pad, 512)
    while c_pad % tn:
        tn -= 128
    k_pad = _round_up(K, 128)
    if k_pad <= 1024:
        tk = k_pad                        # single K step for common channel counts
    else:
        tk = 1024
        while k_pad % tk:
            tk -= 128
    res_bytes = 2 if has_residual else 0
    tm = 256
    for cand in (2048, 1536, 1024, 768, 512, 384, 256):
        if _tile_vmem_bytes(cand, tk, tn, out_bytes, res_bytes) <= (budget * 4) // 5:
            tm = cand
            break
    # v7x has two TensorCores: keep >= 2 blocks along a parallel grid axis
    # when the Cout axis has already collapsed to a single block.
    if c_pad == tn and M > 512:
        tm = min(tm, max(256, _round_up((M + 1) // 2, 256)))
    tm = min(tm, _round_up(M, 8))         # never exceed the (padded) problem
    m_pad = _round_up(M, tm)
    return tm, tn, tk, m_pad, c_pad, k_pad


def fused_conv_gemm(patches, w_mat, bias, *, relu,
                    residual=None, out_dtype=jnp.bfloat16):
    """out = [relu]( patches @ w_mat + bias [+ residual] ).

    patches:  (M, K) activation patches (im2col rows), BN scale already folded
              into w_mat, BN bias already folded into `bias`.
    residual: optional (M, Cout) identity shortcut added before the ReLU.
    """
    M, K = patches.shape
    Cout = w_mat.shape[1]

    budget = _vmem_budget_bytes()
    out_bytes = jnp.dtype(out_dtype).itemsize
    tm, tn, tk, m_pad, c_pad, k_pad = _select_tiles(
        M, K, Cout, out_bytes, residual is not None, budget)
    grid = (m_pad // tm, c_pad // tn, k_pad // tk)

    # bf16 GEMM operands (f32 accumulate in-kernel), f32 bias, lane-dense pads.
    x_p = _pad2(patches, m_pad, k_pad, jnp.bfloat16)
    w_p = _pad2(w_mat, k_pad, c_pad, jnp.bfloat16)
    b_p = _pad2(bias.astype(jnp.float32)[None, :], 1, c_pad, jnp.float32)

    in_specs = [
        pl.BlockSpec((tm, tk), lambda i, j, k: (i, k)),
        pl.BlockSpec((tk, tn), lambda i, j, k: (k, j)),
        pl.BlockSpec((1, tn), lambda i, j, k: (0, j)),
    ]
    args = [x_p, w_p, b_p]

    if residual is not None:
        r_p = _pad2(residual, m_pad, c_pad, jnp.bfloat16)
        # Constant block index across k -> fetched once per (i, j), not per step.
        in_specs.append(pl.BlockSpec((tm, tn), lambda i, j, k: (i, j)))
        args.append(r_p)
        kernel = functools.partial(_gemm_bias_res_kernel, relu=relu)
    else:
        kernel = functools.partial(_gemm_bias_kernel, relu=relu)

    out = pl.pallas_call(
        kernel,
        out_shape=jax.ShapeDtypeStruct((m_pad, c_pad), out_dtype),
        grid=grid,
        in_specs=in_specs,
        out_specs=pl.BlockSpec((tm, tn), lambda i, j, k: (i, j)),
        scratch_shapes=[pltpu.VMEM((tm, tn), jnp.float32)],
        compiler_params=pltpu.CompilerParams(
            dimension_semantics=("parallel", "parallel", "arbitrary"),
            vmem_limit_bytes=int(budget)),
    )(*args)

    return out[:M, :Cout]


# ------------------------------- JAX glue -----------------------------------

def _im2col(x_nhwc, ksize, stride, pad):
    """im2col patch extraction (layout glue; the GEMM runs in the kernel).

    TODO(synk): patches are still materialized in HBM (in bf16); a fully fused
    9-tap-reduction conv via shifted-window BlockSpecs / manual DMA would
    remove this 9x activation write+read entirely (largest remaining win on
    these HBM-bound layers).
    """
    N, H, W, C = x_nhwc.shape
    xp = jnp.pad(x_nhwc, ((0, 0), (pad, pad), (pad, pad), (0, 0)))
    Ho = (H + 2 * pad - ksize) // stride + 1
    Wo = (W + 2 * pad - ksize) // stride + 1
    cols = []
    for kh in range(ksize):
        for kw in range(ksize):
            cols.append(
                xp[:, kh:kh + stride * Ho:stride, kw:kw + stride * Wo:stride, :])
    patches = jnp.concatenate(cols, axis=-1)           # (N, Ho, Wo, k*k*C)
    return patches.reshape(N * Ho * Wo, ksize * ksize * C), Ho, Wo


def _w_to_mat(w_oihw):
    """(Cout, Cin, kh, kw) -> (kh*kw*Cin, Cout), matching im2col ordering."""
    Cout = w_oihw.shape[0]
    return jnp.transpose(w_oihw, (2, 3, 1, 0)).reshape(-1, Cout)


def _fold_bn(gamma, beta, mean, var):
    scale = gamma / jnp.sqrt(var + EPS)
    return scale, beta - mean * scale


def basic_block_forward(x_nchw, p, stride):
    """Pallas BasicBlock forward.  x: (N, Cin, H, W) f32 -> (N, planes, Ho, Wo) f32."""
    N, Cin, H, W = x_nchw.shape
    planes = p["w1"].shape[0]
    x = jnp.transpose(x_nchw, (0, 2, 3, 1)).astype(jnp.bfloat16)   # NHWC, bf16

    # ---- conv1 + bn1 + relu (bf16 output feeds conv2's patch extraction) ----
    patches1, Ho, Wo = _im2col(x, 3, stride, 1)
    s1, b1 = _fold_bn(p["g1"], p["b1"], p["m1"], p["v1"])
    w1 = _w_to_mat(p["w1"]).astype(jnp.float32) * s1[None, :]
    out1 = fused_conv_gemm(patches1, w1, b1, relu=True, out_dtype=jnp.bfloat16)

    # ---- conv2 + bn2 + shortcut + relu, all fused into one kernel ----
    out1_img = out1.reshape(N, Ho, Wo, planes)
    patches2, _, _ = _im2col(out1_img, 3, 1, 1)
    s2, b2 = _fold_bn(p["g2"], p["b2"], p["m2"], p["v2"])
    w2 = _w_to_mat(p["w2"]).astype(jnp.float32) * s2[None, :]

    if stride != 1 or Cin != planes:
        # Projection shortcut (1x1 conv + BN) folded into the main GEMM:
        # xs concatenated along K of the patches, its scale-folded weight
        # along K of W, its BN bias merged into the bias.
        xs = x[:, ::stride, ::stride, :].reshape(-1, Cin)
        ss, bs = _fold_bn(p["gs"], p["bs"], p["ms"], p["vs"])
        ws = p["ws"].reshape(planes, Cin).T.astype(jnp.float32) * ss[None, :]
        assert ws.shape[1] == w2.shape[1]      # shortcut Cout == conv2 Cout
        patches_all = jnp.concatenate([patches2, xs.astype(patches2.dtype)], axis=1)
        w_all = jnp.concatenate([w2, ws], axis=0)
        out2 = fused_conv_gemm(patches_all, w_all, b2 + bs, relu=True,
                               out_dtype=jnp.bfloat16)
    else:
        # Identity shortcut: residual add fused into the kernel epilogue.
        res = x.reshape(-1, Cin)
        out2 = fused_conv_gemm(patches2, w2, b2, relu=True, residual=res,
                               out_dtype=jnp.bfloat16)

    out2 = out2.reshape(N, Ho, Wo, planes)
    return jnp.transpose(out2, (0, 3, 1, 2)).astype(jnp.float32)


# --------------------------- pure-JAX reference ------------------------------

def _ref_bn(y, g, b, m, v):
    g, b, m, v = (t[None, :, None, None] for t in (g, b, m, v))
    return (y - m) / jnp.sqrt(v + EPS) * g + b


def basic_block_reference(x, p, stride):
    dn = ("NCHW", "OIHW", "NCHW")
    planes, Cin = p["w1"].shape[0], x.shape[1]
    out = lax.conv_general_dilated(x, p["w1"], (stride, stride),
                                   [(1, 1), (1, 1)], dimension_numbers=dn)
    out = jax.nn.relu(_ref_bn(out, p["g1"], p["b1"], p["m1"], p["v1"]))
    out = lax.conv_general_dilated(out, p["w2"], (1, 1),
                                   [(1, 1), (1, 1)], dimension_numbers=dn)
    out = _ref_bn(out, p["g2"], p["b2"], p["m2"], p["v2"])
    if stride != 1 or Cin != planes:
        sc = lax.conv_general_dilated(x, p["ws"], (stride, stride),
                                      [(0, 0), (0, 0)], dimension_numbers=dn)
        sc = _ref_bn(sc, p["gs"], p["bs"], p["ms"], p["vs"])
    else:
        sc = x
    return jax.nn.relu(out + sc)


# --------------------------------- main --------------------------------------

def _init_params(key, in_planes, planes):
    ks = jax.random.split(key, 16)

    def bn_params(k0, k1, k2, k3, c):
        return (jax.random.uniform(k0, (c,), jnp.float32, 0.5, 1.5),   # gamma
                0.1 * jax.random.normal(k1, (c,), jnp.float32),        # beta
                0.1 * jax.random.normal(k2, (c,), jnp.float32),        # running_mean
                jax.random.uniform(k3, (c,), jnp.float32, 0.5, 1.5))   # running_var

    p = {}
    p["w1"] = 0.1 * jax.random.normal(ks[0], (planes, in_planes, 3, 3), jnp.float32)
    p["g1"], p["b1"], p["m1"], p["v1"] = bn_params(ks[1], ks[2], ks[3], ks[4], planes)
    p["w2"] = 0.1 * jax.random.normal(ks[5], (planes, planes, 3, 3), jnp.float32)
    p["g2"], p["b2"], p["m2"], p["v2"] = bn_params(ks[6], ks[7], ks[8], ks[9], planes)
    p["ws"] = 0.1 * jax.random.normal(ks[10], (planes, in_planes, 1, 1), jnp.float32)
    p["gs"], p["bs"], p["ms"], p["vs"] = bn_params(ks[11], ks[12], ks[13], ks[14], planes)
    return p


def _check(x, params, stride, tag):
    out = jax.block_until_ready(basic_block_forward(x, params, stride))
    ref = jax.block_until_ready(basic_block_reference(x, params, stride))
    assert out.shape == ref.shape, (tag, out.shape, ref.shape)
    err = float(jnp.max(jnp.abs(out.astype(jnp.float32) - ref)))
    assert jnp.allclose(out.astype(jnp.float32), ref, rtol=3e-2, atol=3e-2), (tag, err)


if __name__ == "__main__":
    key = jax.random.PRNGKey(0)
    kx1, kp1, kx2, kp2 = jax.random.split(key, 4)

    # Case 1: stride=2 + channel change -> exercises the K-folded 1x1-projection
    # shortcut.  batch=2, in_planes=4, planes=8, spatial 16x16.
    x1 = jax.random.normal(kx1, (2, 4, 16, 16), jnp.float32)
    p1 = _init_params(kp1, 4, 8)
    _check(x1, p1, stride=2, tag="proj_shortcut")

    # Case 2: stride=1, in_planes == planes -> exercises the fused
    # identity-residual kernel.
    x2 = jax.random.normal(kx2, (2, 8, 16, 16), jnp.float32)
    p2 = _init_params(kp2, 8, 8)
    _check(x2, p2, stride=1, tag="identity_shortcut")

    # TODO(synk): BatchNorm is implemented in inference mode (running stats);
    # training-mode batch statistics would need an extra reduction kernel.
    print("KERNEL_OK")
</pallas_src>

<mosaic_0001>
module attributes {stable_mosaic.version = 11 : i64} {
  func.func @_gemm_bias_kernel(%arg0: i32, %arg1: i32, %arg2: i32, %arg3: memref<128x128xbf16, #tpu.memory_space<vmem>>, %arg4: memref<128x128xbf16, #tpu.memory_space<vmem>>, %arg5: memref<1x128xf32, #tpu.memory_space<vmem>>, %arg6: memref<128x128xbf16, #tpu.memory_space<vmem>>, %arg7: memref<128x128xf32, #tpu.memory_space<vmem>>) attributes {dimension_semantics = [#tpu.dimension_semantics<parallel>, #tpu.dimension_semantics<parallel>, #tpu.dimension_semantics<arbitrary>], iteration_bounds = array<i64: 1, 1, 1>, scalar_prefetch = 0 : i64, scratch_operands = 1 : i64, tpu.core_type = #tpu.core_type<tc>, window_params = [{transform_indices = @transform_0, window_bounds = array<i64: 128, 128>}, {transform_indices = @transform_1, window_bounds = array<i64: 128, 128>}, {transform_indices = @transform_2, window_bounds = array<i64: 1, 128>}, {transform_indices = @transform_3, window_bounds = array<i64: 128, 128>}]} {
    %c0_i32 = arith.constant 0 : i32
    %0 = arith.cmpi eq, %arg2, %c0_i32 : i32
    %1 = arith.extui %0 : i1 to i32
    %c0_i32_0 = arith.constant 0 : i32
    %2 = arith.cmpi ne, %1, %c0_i32_0 : i32
    scf.if %2 {
      %cst_10 = arith.constant 0.000000e+00 : f32
      %12 = vector.broadcast %cst_10 : f32 to vector<128x128xf32>
      %c0_11 = arith.constant 0 : index
      %c0_12 = arith.constant 0 : index
      %13 = vector.load %arg7[%c0_11, %c0_12] : memref<128x128xf32, #tpu.memory_space<vmem>>, vector<128x128xf32>
      tpu.vector_store %arg7[%c0_11, %c0_12], %12 {strides = array<i32>} : memref<128x128xf32, #tpu.memory_space<vmem>>, vector<128x128xf32>,
    } else {
    }
    %c0 = arith.constant 0 : index
    %c0_1 = arith.constant 0 : index
    %3 = vector.load %arg7[%c0, %c0_1] : memref<128x128xf32, #tpu.memory_space<vmem>>, vector<128x128xf32>
    %c0_2 = arith.constant 0 : index
    %c0_3 = arith.constant 0 : index
    %4 = vector.load %arg3[%c0_2, %c0_3] : memref<128x128xbf16, #tpu.memory_space<vmem>>, vector<128x128xbf16>
    %c0_4 = arith.constant 0 : index
    %c0_5 = arith.constant 0 : index
    %5 = vector.load %arg4[%c0_4, %c0_5] : memref<128x128xbf16, #tpu.memory_space<vmem>>, vector<128x128xbf16>
    %cst = arith.constant dense<0.000000e+00> : vector<128x128xf32>
    %6 = tpu.matmul %4, %5, %cst {dimension_numbers = #tpu.dot_dimension_numbers<[1], [0], [0], [1], [0, 0, 1, 1], [], []>} : vector<128x128xbf16>, vector<128x128xbf16>, vector<128x128xf32> -> vector<128x128xf32>
    %7 = arith.addf %3, %6 : vector<128x128xf32>
    %c0_6 = arith.constant 0 : index
    %c0_7 = arith.constant 0 : index
    %8 = vector.load %arg7[%c0_6, %c0_7] : memref<128x128xf32, #tpu.memory_space<vmem>>, vector<128x128xf32>
    tpu.vector_store %arg7[%c0_6, %c0_7], %7 {strides = array<i32>} : memref<128x128xf32, #tpu.memory_space<vmem>>, vector<128x128xf32>,
    %c0_i32_8 = arith.constant 0 : i32
    %9 = arith.cmpi eq, %arg2, %c0_i32_8 : i32
    %10 = arith.extui %9 : i1 to i32
    %c0_i32_9 = arith.constant 0 : i32
    %11 = arith.cmpi ne, %10, %c0_i32_9 : i32
    scf.if %11 {
      %c0_10 = arith.constant 0 : index
      %c0_11 = arith.constant 0 : index
      %12 = vector.load %arg7[%c0_10, %c0_11] : memref<128x128xf32, #tpu.memory_space<vmem>>, vector<128x128xf32>
      %c0_12 = arith.constant 0 : index
      %c0_13 = arith.constant 0 : index
      %13 = vector.load %arg5[%c0_12, %c0_13] : memref<1x128xf32, #tpu.memory_space<vmem>>, vector<1x128xf32>
      %14 = vector.broadcast %13 : vector<1x128xf32> to vector<128x128xf32>
      %15 = arith.addf %12, %14 : vector<128x128xf32>
      %cst_14 = arith.constant 0.000000e+00 : f32
      %16 = vector.broadcast %cst_14 : f32 to vector<128x128xf32>
      %17 = arith.maximumf %15, %16 : vector<128x128xf32>
      %18 = arith.truncf %17 : vector<128x128xf32> to vector<128x128xbf16>
      %c0_15 = arith.constant 0 : index
      %c0_16 = arith.constant 0 : index
      %19 = vector.load %arg6[%c0_15, %c0_16] : memref<128x128xbf16, #tpu.memory_space<vmem>>, vector<128x128xbf16>
      tpu.vector_store %arg6[%c0_15, %c0_16], %18 {strides = array<i32>} : memref<128x128xbf16, #tpu.memory_space<vmem>>, vector<128x128xbf16>,
    } else {
    }
    return
  }
  func.func @transform_0(%arg0: i32, %arg1: i32, %arg2: i32) -> (i32, i32) {
    %c0_i32 = arith.constant 0 : i32
    return %arg0, %arg2 : i32, i32
  }
  func.func @transform_1(%arg0: i32, %arg1: i32, %arg2: i32) -> (i32, i32) {
    %c0_i32 = arith.constant 0 : i32
    return %arg2, %arg1 : i32, i32
  }
  func.func @transform_2(%arg0: i32, %arg1: i32, %arg2: i32) -> (i32, i32) {
    %c0_i32 = arith.constant 0 : i32
    %c0_i32_0 = arith.constant 0 : i32
    return %c0_i32, %arg1 : i32, i32
  }
  func.func @transform_3(%arg0: i32, %arg1: i32, %arg2: i32) -> (i32, i32) {
    %c0_i32 = arith.constant 0 : i32
    return %arg0, %arg1 : i32, i32
  }
}

</mosaic_0001>

<bundles_post_ra>
// kernel: tpu_custom_call.1
= control target key start
LH: loop header
LB: loop body
LE: loop exit
PB: predicated region body
PF: predicated region fallthrough
CT: control target
= control target key end

     0   :  { %8 = vsyncpa [#allocation4], 0  ;;  %s680_s0 = inlined_call_operand.hbm [shape: bf16[128,128], index: 0, kind: input, shape index: {}]   ;;  %s681_s1 = inlined_call_operand.hbm [shape: bf16[128,128], index: 1, kind: input, shape index: {}]   ;;  %s682_s2 = inlined_call_operand.vmem [shape: f32[1,128], index: 2, kind: input, shape index: {}]   ;;  %s683_s3 = inlined_call_operand.hbm [shape: bf16[128,128], index: 3, kind: output, shape index: {}]  }
   0x1   :  { %9 = vsyncpa [#allocation7], 0 }
   0x2   :  { %10 = vsyncpa [#allocation5], 0  ;;  %s15_s14 = sshll.u32 %s680_s0, 4  ;;  %s634_s15 = smov [#allocation3]   ;;  %s16_s14 = int_to_ptr.hbm [resolvable:$true] %s15_s14 }
   0x3   :  { %s17_s16 = sshll.u32 %s634_s15, 4  ;;  %s28_s19 = sshll.u32 %s681_s1, 4  ;;  %s18_s16 = int_to_ptr.vmem [resolvable:$true] %s17_s16  ;;  %s29_s19 = int_to_ptr.hbm [resolvable:$true] %s28_s19 }
   0x4   :  { %s635_s20 = smov 64   ;;  %s636_s21 = smov 4  }
   0x5   :  { %23 = dma.hbm_to_vmem [thread:$0]  %s16_s14, 1024, %s18_s16, [#allocation4], %s635_s20, %s635_s20, %s636_s21  }
   0x6   :  { %s637_s22 = smov [#allocation6]  }
   0x7   :  { %s30_s23 = sshll.u32 %s637_s22, 4  ;;  %s31_s23 = int_to_ptr.vmem [resolvable:$true] %s30_s23 }
   0x8   :  { %36 = dma.hbm_to_vmem [thread:$0]  %s29_s19, 1024, %s31_s23, [#allocation7], %s635_s20, %s635_s20, %s636_s21  }
   0x9   :  { %628 = dma.done.wait [#allocation4], 1024  }
   0xa   :  { %629 = vsyncadd [#allocation4], 4294966272 }
   0xb   :  { %630 = dma.done.wait [#allocation7], 1024  }
   0xc   :  { %631 = vsyncadd [#allocation7], 4294966272  ;;  %v478_v0 = vld [vmem:[#allocation6 + $0x38] sm:$0xff]  ;;  %v477_v1 = vld [vmem:[#allocation6 + $0x30] sm:$0xff]  ;;  %s385_s27 = sshll.u32 %s683_s3, 4  ;;  %s386_s27 = int_to_ptr.hbm [resolvable:$true] %s385_s27 }
   0xd   :  { %211 = vmatpush.bf16.msra.mxu0 %v478_v0  ;;  %526 = vmatpush.bf16.msra.mxu1 %v478_v0  ;;  %v476_v2 = vld [vmem:[#allocation6 + $0x28] sm:$0xff]  ;;  %v475_v3 = vld [vmem:[#allocation6 + $0x20] sm:$0xff]  ;;  %v474_v4 = vld [vmem:[#allocation6 + $0x18] sm:$0xff] }
   0xe   :  { %527 = vmatpush.bf16.msra.mxu2 %v478_v0  ;;  %528 = vmatpush.bf16.msra.mxu3 %v478_v0  ;;  %v473_v5 = vld [vmem:[#allocation6 + $0x10] sm:$0xff]  ;;  %v472_v6 = vld [vmem:[#allocation6 + $0x8] sm:$0xff]  ;;  %v471_v7 = vld [vmem:[#allocation6] sm:$0xff] }
   0xf   :  { %v463_v8 = vld [vmem:[#allocation3] sm:$0xff]  ;;  %v465_v9 = vld [vmem:[#allocation3 + $0x10] sm:$0xff]  ;;  %v464_v12 = vld [vmem:[#allocation3 + $0x8] sm:$0xff] }
  0x10   :  { %v467_v10 = vld [vmem:[#allocation3 + $0x20] sm:$0xff]  ;;  %v469_v11 = vld [vmem:[#allocation3 + $0x30] sm:$0xff]  ;;  %v466_v13 = vld [vmem:[#allocation3 + $0x18] sm:$0xff] }
  0x11   :  { %212 = vmatpush.bf16.msra.mxu0 %v477_v1  ;;  %529 = vmatpush.bf16.msra.mxu1 %v477_v1  ;;  %v468_v14 = vld [vmem:[#allocation3 + $0x28] sm:$0xff]  ;;  %v470_v15 = vld [vmem:[#allocation3 + $0x38] sm:$0xff]  ;;  %v555_v18 = vld [vmem:[%s682_s2] ss:$0 sm:$0xff]  ;;  %s638_s2 = smov [#allocation8]  }
  0x12   :  { %530 = vmatpush.bf16.msra.mxu2 %v477_v1  ;;  %531 = vmatpush.bf16.msra.mxu3 %v477_v1  ;;  %s383_s24 = sshll.u32 %s638_s2, 4  ;;  %s384_s24 = int_to_ptr.vmem [resolvable:$true] %s383_s24 }
  0x15   :  { %213 = vmatpush.bf16.msra.mxu0 %v476_v2  ;;  %532 = vmatpush.bf16.msra.mxu1 %v476_v2 }
  0x16   :  { %533 = vmatpush.bf16.msra.mxu2 %v476_v2  ;;  %534 = vmatpush.bf16.msra.mxu3 %v476_v2 }
  0x19   :  { %214 = vmatpush.bf16.msra.mxu0 %v475_v3  ;;  %535 = vmatpush.bf16.msra.mxu1 %v475_v3 }
  0x1a   :  { %536 = vmatpush.bf16.msra.mxu2 %v475_v3  ;;  %537 = vmatpush.bf16.msra.mxu3 %v475_v3 }
  0x1d   :  { %215 = vmatpush.bf16.msra.mxu0 %v474_v4  ;;  %538 = vmatpush.bf16.msra.mxu1 %v474_v4 }
  0x1e   :  { %539 = vmatpush.bf16.msra.mxu2 %v474_v4  ;;  %540 = vmatpush.bf16.msra.mxu3 %v474_v4 }
  0x21   :  { %216 = vmatpush.bf16.msra.mxu0 %v473_v5  ;;  %541 = vmatpush.bf16.msra.mxu1 %v473_v5 }
  0x22   :  { %542 = vmatpush.bf16.msra.mxu2 %v473_v5  ;;  %543 = vmatpush.bf16.msra.mxu3 %v473_v5 }
  0x25   :  { %217 = vmatpush.bf16.msra.mxu0 %v472_v6  ;;  %544 = vmatpush.bf16.msra.mxu1 %v472_v6 }
  0x26   :  { %545 = vmatpush.bf16.msra.mxu2 %v472_v6  ;;  %546 = vmatpush.bf16.msra.mxu3 %v472_v6 }
  0x29   :  { %218 = vmatpush.bf16.msra.mxu0 %v471_v7  ;;  %547 = vmatpush.bf16.msra.mxu1 %v471_v7 }
  0x2a   :  { %548 = vmatpush.bf16.msra.mxu2 %v471_v7  ;;  %549 = vmatpush.bf16.msra.mxu3 %v471_v7 }
  0x2c   :  { %219 = vmatmul.bf16.vlgmr.msra.gmra.mxu0 %v463_v8  ;;  %229 = vmatmul.bf16.vlgmr.msra.gmra.mxu1 %v465_v9 }
  0x2d   :  { %239 = vmatmul.bf16.vlgmr.msra.gmra.mxu2 %v467_v10  ;;  %249 = vmatmul.bf16.vlgmr.msra.gmra.mxu3 %v469_v11 }
  0x3c   :  { %224 = vmatmul.bf16.gmra.mxu0 %v464_v12  ;;  %234 = vmatmul.bf16.gmra.mxu1 %v466_v13 }
  0x3d   :  { %244 = vmatmul.bf16.gmra.mxu2 %v468_v14  ;;  %254 = vmatmul.bf16.gmra.mxu3 %v470_v15 }
  0xa9   :  { %v220_v16 = vpop.f32.mrf.mxu0  ;;  %v230_v17 = vpop.f32.mrf.mxu1 }
  0xaa   :  { %v315_v19 = vadd.f32 %v555_v18, %v220_v16  ;;  %v319_v20 = vadd.f32 %v555_v18, %v230_v17 }
  0xac   :  { %v331_v27 = vmax.f32 %v315_v19, 0.0  ;;  %v335_v28 = vmax.f32 %v319_v20, 0.0 }
  0xb0   :  { %v240_v21 = vpop.f32.mrf.mxu2  ;;  %v250_v22 = vpop.f32.mrf.mxu3 }
  0xb1   :  { %v222_v23 = vpop.f32.mrf.mxu0  ;;  %v232_v24 = vpop.f32.mrf.mxu1  ;;  %v323_v33 = vadd.f32 %v555_v18, %v240_v21  ;;  %v327_v34 = vadd.f32 %v555_v18, %v250_v22 }
  0xb2   :  { %v316_v25 = vadd.f32 %v555_v18, %v222_v23  ;;  %v320_v26 = vadd.f32 %v555_v18, %v232_v24 }
  0xb3   :  { %v339_v41 = vmax.f32 %v323_v33, 0.0  ;;  %v343_v42 = vmax.f32 %v327_v34, 0.0 }
  0xb4   :  { %v332_v29 = vmax.f32 %v316_v25, 0.0  ;;  %v336_v30 = vmax.f32 %v320_v26, 0.0 }
  0xb6   :  { %v482_v31 = vpack.c.bf16 %v332_v29, %v331_v27  ;;  %v492_v32 = vpack.c.bf16 %v336_v30, %v335_v28 }
  0xb8   :  { %483 = vst [vmem:[#allocation8] sm:$0xff] %v482_v31   ;;  %v242_v35 = vpop.f32.mrf.mxu2  ;;  %v252_v36 = vpop.f32.mrf.mxu3 }
  0xb9   :  { %520 = vst [vmem:[#allocation8 + $0x10] sm:$0xff] %v492_v32   ;;  %v324_v37 = vadd.f32 %v555_v18, %v242_v35  ;;  %v328_v38 = vadd.f32 %v555_v18, %v252_v36  ;;  %v225_v39 = vpop.f32.mrf.mxu0  ;;  %v235_v40 = vpop.f32.mrf.mxu1 }
  0xba   :  { %v317_v47 = vadd.f32 %v555_v18, %v225_v39  ;;  %v321_v48 = vadd.f32 %v555_v18, %v235_v40 }
  0xbb   :  { %v340_v43 = vmax.f32 %v324_v37, 0.0  ;;  %v344_v44 = vmax.f32 %v328_v38, 0.0 }
  0xbc   :  { %v333_v55 = vmax.f32 %v317_v47, 0.0  ;;  %v337_v56 = vmax.f32 %v321_v48, 0.0 }
  0xbd   :  { %v502_v45 = vpack.c.bf16 %v340_v43, %v339_v41  ;;  %v512_v46 = vpack.c.bf16 %v344_v44, %v343_v42 }
  0xbf   :  { %522 = vst [vmem:[#allocation8 + $0x20] sm:$0xff] %v502_v45  }
  0xc0   :  { %524 = vst [vmem:[#allocation8 + $0x30] sm:$0xff] %v512_v46   ;;  %v245_v49 = vpop.f32.mrf.mxu2  ;;  %v255_v50 = vpop.f32.mrf.mxu3 }
  0xc1   :  { %v227_v51 = vpop.f32.mrf.mxu0  ;;  %v237_v52 = vpop.f32.mrf.mxu1  ;;  %v325_v61 = vadd.f32 %v555_v18, %v245_v49  ;;  %v329_v62 = vadd.f32 %v555_v18, %v255_v50 }
  0xc2   :  { %v318_v53 = vadd.f32 %v555_v18, %v227_v51  ;;  %v322_v54 = vadd.f32 %v555_v18, %v237_v52 }
  0xc3   :  { %v341_v3 = vmax.f32 %v325_v61, 0.0  ;;  %v345_v4 = vmax.f32 %v329_v62, 0.0 }
  0xc4   :  { %v334_v57 = vmax.f32 %v318_v53, 0.0  ;;  %v338_v58 = vmax.f32 %v322_v54, 0.0 }
  0xc6   :  { %v487_v59 = vpack.c.bf16 %v334_v57, %v333_v55  ;;  %v497_v60 = vpack.c.bf16 %v338_v58, %v337_v56 }
  0xc8   :  { %519 = vst [vmem:[#allocation8 + $0x8] sm:$0xff] %v487_v59   ;;  %v247_v63 = vpop.f32.mrf.mxu2  ;;  %v257_v0 = vpop.f32.mrf.mxu3 }
  0xc9   :  { %521 = vst [vmem:[#allocation8 + $0x18] sm:$0xff] %v497_v60   ;;  %v326_v1 = vadd.f32 %v555_v18, %v247_v63  ;;  %v330_v2 = vadd.f32 %v555_v18, %v257_v0 }
  0xcb   :  { %v342_v5 = vmax.f32 %v326_v1, 0.0  ;;  %v346_v6 = vmax.f32 %v330_v2, 0.0 }
  0xcd   :  { %v507_v7 = vpack.c.bf16 %v342_v5, %v341_v3  ;;  %v517_v8 = vpack.c.bf16 %v346_v6, %v345_v4 }
  0xcf   :  { %523 = vst [vmem:[#allocation8 + $0x28] sm:$0xff] %v507_v7  }
  0xd0   :  { %525 = vst [vmem:[#allocation8 + $0x38] sm:$0xff] %v517_v8  }
  0xd1   :  { %391 = dma.vmem_to_hbm [thread:$0]  %s384_s24, 1024, %s386_s27, [#allocation5], %s635_s20, %s635_s20, %s636_s21  }
  0xd2   :  { %632 = dma.done.wait [#allocation5], 1024  }
  0xd3   :  { %633 = vsyncadd [#allocation5], 4294966272 }
  0xd4   :  { %396 = vsyncpa [#allocation4], 1 }
  0xd5   :  { %397 = vsyncpa [#allocation7], 1 }
  0xd6   :  { %398 = vsyncpa [#allocation5], 1 }

</bundles_post_ra>
